<compile_context>
chip_gen: v7x
topology: tpu7x:2x2x1
jax: 0.10.0
libtpu: 0.0.40
codegen_flags: <defaults>
</compile_context>

<pallas_src>
import functools

import jax
import jax.numpy as jnp
from jax.experimental import pallas as pl
from jax.experimental.pallas import tpu as pltpu


_INV_SQRT2 = 0.7071067811865476
_SQRT_2_OVER_PI = 0.7978845608028654


def _round_up(x, m):
    return ((x + m - 1) // m) * m


def _gelu_f32(x, approximate):
    # Computed in f32: exact (erf) GELU matches F.gelu default and lowers on all
    # TPU generations (v5e has no bf16 VALU).  The tanh variant offloads to EUP.
    x = x.astype(jnp.float32)
    if approximate:
        return 0.5 * x * (1.0 + jnp.tanh(_SQRT_2_OVER_PI * (x + 0.044715 * x * x * x)))
    return 0.5 * x * (1.0 + jax.lax.erf(x * _INV_SQRT2))


def _tpu_generation():
    try:
        kind = jax.devices()[0].device_kind.lower()
    except Exception:
        return 0
    for g in (7, 6, 5, 4, 3, 2):
        if ("v%d" % g) in kind or ("tpu%d" % g) in kind:
            return g
    return 0


def _hw_config():
    gen = _tpu_generation()
    if gen >= 7:   # v7x: 64 MiB VMEM/TC, 2 TCs, 256-wide MXU, ~3.2 TB/s HBM
        return dict(tm=512, ti=1024, vmem_limit=52 * 1024 * 1024, lane_align=256, num_cores=2)
    if gen == 6:   # v6e: 128 MiB VMEM, 1 TC, 256-wide MXU
        return dict(tm=768, ti=1024, vmem_limit=100 * 1024 * 1024, lane_align=256, num_cores=1)
    if gen == 5:   # v5e/v5p: 128 MiB VMEM, 128-wide MXU
        return dict(tm=512, ti=1024, vmem_limit=96 * 1024 * 1024, lane_align=128, num_cores=1)
    # Unknown / older generation: conservative defaults (always safe).
    return dict(tm=256, ti=512, vmem_limit=48 * 1024 * 1024, lane_align=128, num_cores=1)


def _per_tile_vmem(tm, E_p, i_cols, x_bytes, out_bytes, streaming):
    cost = 2 * tm * E_p * x_bytes      # double-buffered x tiles
    cost += 2 * tm * E_p * out_bytes   # double-buffered output tiles
    cost += 2 * tm * i_cols * 4        # fc result + GELU temporaries (f32)
    cost += tm * E_p * 4               # proj result (f32) before the output cast
    if streaming:
        cost += tm * E_p * 4           # resident f32 accumulator scratch
    return cost


# ---------------------------------------------------------------------------
# Kernels
# ---------------------------------------------------------------------------

def _mlp_resident_kernel(x_ref, wfc_ref, bfc_ref, wproj_ref, bproj_ref, o_ref,
                         *, mxu_dtype, approximate_gelu):
    # grid = (token tiles,).  Full weight shard is VMEM-resident (constant
    # index_map -> DMA'd once, reused by every token tile).
    x = x_ref[...].astype(mxu_dtype)
    h = jnp.dot(x, wfc_ref[...], preferred_element_type=jnp.float32)
    h = _gelu_f32(h + bfc_ref[...], approximate_gelu)
    y = jnp.dot(h.astype(wproj_ref.dtype), wproj_ref[...],
                preferred_element_type=jnp.float32)
    o_ref[...] = (y + bproj_ref[...]).astype(o_ref.dtype)


def _mlp_streaming_kernel(x_ref, wfc_ref, bfc_ref, wproj_ref, bproj_ref, o_ref,
                          acc_ref, *, mxu_dtype, approximate_gelu):
    # grid = (token tiles i, I_shard chunks k).  Weight chunks stream over k with
    # a resident f32 accumulator; used only when the shard does not fit VMEM.
    k = pl.program_id(1)

    @pl.when(k == 0)
    def _():
        acc_ref[...] = jnp.zeros_like(acc_ref)

    x = x_ref[...].astype(mxu_dtype)
    h = jnp.dot(x, wfc_ref[...], preferred_element_type=jnp.float32)
    h = _gelu_f32(h + bfc_ref[...], approximate_gelu)
    acc_ref[...] += jnp.dot(h.astype(wproj_ref.dtype), wproj_ref[...],
                            preferred_element_type=jnp.float32)

    @pl.when(k == pl.num_programs(1) - 1)
    def _():
        o_ref[...] = (acc_ref[...] + bproj_ref[...]).astype(o_ref.dtype)


# ---------------------------------------------------------------------------
# Wrapper
# ---------------------------------------------------------------------------

def prepare_gpt2_mlp_params(w_fc, b_fc, w_proj, b_proj, *,
                            compute_dtype=jnp.bfloat16,
                            approximate_gelu=False,
                            force_streaming=False):
    """One-time pad + cast of the Conv1D weights (no per-call HBM traffic)."""
    hw = _hw_config()
    E, I_shard = w_fc.shape
    assert w_proj.shape == (I_shard, E)
    assert b_fc.shape == (I_shard,) and b_proj.shape == (E,)

    lane = hw["lane_align"]
    cdt = jnp.dtype(compute_dtype)
    E_p = _round_up(E, lane)
    I_p = _round_up(I_shard, lane)
    budget = int(hw["vmem_limit"] * 0.85)

    # Resident fast path if the full shard (with 2x buffering slack) fits half
    # the budget; the other half is left for activation tiles.
    resident_weight_cost = 2 * 2 * E_p * I_p * cdt.itemsize
    use_resident = (not force_streaming) and resident_weight_cost <= budget // 2

    ti = None
    stream_weight_cost = 0
    if not use_resident:
        ti = min(hw["ti"], I_p)
        while ti > 128 and 2 * 2 * E_p * ti * cdt.itemsize > budget // 2:
            ti = max(128, (ti // 2) // 128 * 128)
        I_p = _round_up(I_shard, ti)
        stream_weight_cost = 2 * 2 * E_p * ti * cdt.itemsize

    wfc_p = jnp.pad(w_fc, ((0, E_p - E), (0, I_p - I_shard))).astype(cdt)
    bfc_p = jnp.pad(b_fc, (0, I_p - I_shard)).reshape(1, I_p).astype(jnp.float32)
    wproj_p = jnp.pad(w_proj, ((0, I_p - I_shard), (0, E_p - E))).astype(cdt)
    bproj_p = jnp.pad(b_proj, (0, E_p - E)).reshape(1, E_p).astype(jnp.float32)

    meta = dict(E=E, I_shard=I_shard, E_p=E_p, I_p=I_p, ti=ti,
                compute_dtype=cdt, approximate_gelu=approximate_gelu,
                use_resident=use_resident,
                resident_weight_cost=resident_weight_cost,
                stream_weight_cost=stream_weight_cost,
                hw=hw)
    return (wfc_p, bfc_p, wproj_p, bproj_p), meta


def _gpt2_mlp_forward(hidden_states, wfc_p, bfc_p, wproj_p, bproj_p, *, meta):
    B, S, E = hidden_states.shape
    assert E == meta["E"], "embed dim mismatch with prepared weights"
    hw = meta["hw"]
    E_p, I_p = meta["E_p"], meta["I_p"]
    cdt = meta["compute_dtype"]
    M = B * S

    x_bytes = jnp.dtype(hidden_states.dtype).itemsize
    out_bytes = x_bytes
    budget = int(hw["vmem_limit"] * 0.85)
    use_resident = meta["use_resident"]
    w_cost = meta["resident_weight_cost"] if use_resident else meta["stream_weight_cost"]
    i_cols = I_p if use_resident else meta["ti"]

    # Token tile: as large as the VMEM budget allows, clamped to the token count;
    # on multi-TC chips (v7x) keep >= 2 tiles so the "parallel" axis feeds both cores.
    tm = hw["tm"]
    while tm > 16 and _per_tile_vmem(tm, E_p, i_cols, x_bytes, out_bytes,
                                     not use_resident) + w_cost > budget:
        tm //= 2
    tm = max(_round_up(tm, 16), 16)
    tm = min(tm, _round_up(M, 16))
    if hw["num_cores"] >= 2 and M > 16:
        tm = min(tm, _round_up(-(-M // 2), 16))
    M_p = _round_up(M, tm)

    # Activations stay in their stored dtype (cast to MXU dtype inside the kernel);
    # pad only when the lane-dense layout requires it.
    x2d = hidden_states.reshape(M, E)
    if (M_p, E_p) != (M, E):
        x2d = jnp.pad(x2d, ((0, M_p - M), (0, E_p - E)))

    kernel_kw = dict(mxu_dtype=cdt, approximate_gelu=meta["approximate_gelu"])

    if use_resident:
        out2d = pl.pallas_call(
            functools.partial(_mlp_resident_kernel, **kernel_kw),
            out_shape=jax.ShapeDtypeStruct((M_p, E_p), hidden_states.dtype),
            grid_spec=pltpu.PrefetchScalarGridSpec(
                num_scalar_prefetch=0,
                grid=(M_p // tm,),
                in_specs=[
                    pl.BlockSpec((tm, E_p), lambda i: (i, 0)),    # x tile
                    pl.BlockSpec((E_p, I_p), lambda i: (0, 0)),   # W_fc (resident)
                    pl.BlockSpec((1, I_p), lambda i: (0, 0)),     # b_fc
                    pl.BlockSpec((I_p, E_p), lambda i: (0, 0)),   # W_proj (resident)
                    pl.BlockSpec((1, E_p), lambda i: (0, 0)),     # b_proj
                ],
                out_specs=pl.BlockSpec((tm, E_p), lambda i: (i, 0)),
            ),
            compiler_params=pltpu.CompilerParams(
                dimension_semantics=("parallel",),
                vmem_limit_bytes=hw["vmem_limit"],
            ),
        )(x2d, wfc_p, bfc_p, wproj_p, bproj_p)
    else:
        ti = meta["ti"]
        out2d = pl.pallas_call(
            functools.partial(_mlp_streaming_kernel, **kernel_kw),
            out_shape=jax.ShapeDtypeStruct((M_p, E_p), hidden_states.dtype),
            grid_spec=pltpu.PrefetchScalarGridSpec(
                num_scalar_prefetch=0,
                grid=(M_p // tm, I_p // ti),
                in_specs=[
                    pl.BlockSpec((tm, E_p), lambda i, k: (i, 0)),   # x tile
                    pl.BlockSpec((E_p, ti), lambda i, k: (0, k)),   # W_fc chunk
                    pl.BlockSpec((1, ti), lambda i, k: (0, k)),     # b_fc chunk
                    pl.BlockSpec((ti, E_p), lambda i, k: (k, 0)),   # W_proj chunk
                    pl.BlockSpec((1, E_p), lambda i, k: (0, 0)),    # b_proj
                ],
                out_specs=pl.BlockSpec((tm, E_p), lambda i, k: (i, 0)),
                scratch_shapes=[pltpu.VMEM((tm, E_p), jnp.float32)],
            ),
            compiler_params=pltpu.CompilerParams(
                dimension_semantics=("parallel", "arbitrary"),
                vmem_limit_bytes=hw["vmem_limit"],
            ),
        )(x2d, wfc_p, bfc_p, wproj_p, bproj_p)

    return out2d[:M, :E].reshape(B, S, E)


def make_gpt2_mlp(w_fc, b_fc, w_proj, b_proj, **kwargs):
    """Pads/casts weights once, returns a jitted forward(hidden_states) callable."""
    params, meta = prepare_gpt2_mlp_params(w_fc, b_fc, w_proj, b_proj, **kwargs)
    fwd = jax.jit(functools.partial(_gpt2_mlp_forward, meta=meta))
    return lambda hidden_states: fwd(hidden_states, *params)


def reference_mlp(x2d, w_fc, b_fc, w_proj, b_proj):
    h = jnp.dot(x2d, w_fc) + b_fc
    h = 0.5 * h * (1.0 + jax.lax.erf(h * _INV_SQRT2))
    return jnp.dot(h, w_proj) + b_proj


if __name__ == "__main__":
    TP = 16
    batch, seq, hidden = 2, 8, 32
    intermediate_size = 4 * hidden          # 128
    i_shard = intermediate_size // TP       # 8

    key = jax.random.PRNGKey(0)
    k_x, k_wfc, k_wproj = jax.random.split(key, 3)

    # deterministic synthetic params, matching nn.init.normal_(std=0.02) + zero bias
    x = jax.random.normal(k_x, (batch, seq, hidden), dtype=jnp.float32)
    w_fc = 0.02 * jax.random.normal(k_wfc, (hidden, i_shard), dtype=jnp.float32)
    b_fc = jnp.zeros((i_shard,), dtype=jnp.float32)
    w_proj = 0.02 * jax.random.normal(k_wproj, (i_shard, hidden), dtype=jnp.float32)
    b_proj = jnp.zeros((hidden,), dtype=jnp.float32)

    ref = reference_mlp(x.reshape(-1, hidden), w_fc, b_fc, w_proj, b_proj)
    ref = ref.reshape(batch, seq, hidden)

    # Exact-semantics validation path (f32 MXU operands, resident weights).
    # Tolerance allows for possible multi-pass lowering of f32 matmuls on the MXU.
    mlp_f32 = make_gpt2_mlp(w_fc, b_fc, w_proj, b_proj, compute_dtype=jnp.float32)
    out_f32 = jax.block_until_ready(mlp_f32(x))
    assert out_f32.shape == (batch, seq, hidden)
    assert jnp.allclose(out_f32, ref, atol=2e-5, rtol=2e-5), "f32 resident path mismatch"

    # Default fast path (bf16 MXU operands, f32 accumulation, resident weights).
    mlp_bf16 = make_gpt2_mlp(w_fc, b_fc, w_proj, b_proj)
    out_bf16 = jax.block_until_ready(mlp_bf16(x))
    assert out_bf16.shape == (batch, seq, hidden)
    assert jnp.allclose(out_bf16, ref, atol=5e-4, rtol=5e-2), "bf16 resident path mismatch"

    # Streaming fallback (k grid axis + f32 accumulator), forced for coverage.
    mlp_stream = make_gpt2_mlp(w_fc, b_fc, w_proj, b_proj, force_streaming=True)
    out_stream = jax.block_until_ready(mlp_stream(x))
    assert out_stream.shape == (batch, seq, hidden)
    assert jnp.allclose(out_stream, ref, atol=5e-4, rtol=5e-2), "streaming path mismatch"

    print("KERNEL_OK")
</pallas_src>

<mosaic_0001>
module attributes {stable_mosaic.version = 11 : i64} {
  func.func @_mlp_resident_kernel(%arg0: i32, %arg1: memref<16x128xf32, #tpu.memory_space<vmem>>, %arg2: memref<128x128xf32, #tpu.memory_space<vmem>>, %arg3: memref<1x128xf32, #tpu.memory_space<vmem>>, %arg4: memref<128x128xf32, #tpu.memory_space<vmem>>, %arg5: memref<1x128xf32, #tpu.memory_space<vmem>>, %arg6: memref<16x128xf32, #tpu.memory_space<vmem>>) attributes {dimension_semantics = [#tpu.dimension_semantics<parallel>], iteration_bounds = array<i64: 1>, scalar_prefetch = 0 : i64, scratch_operands = 0 : i64, tpu.core_type = #tpu.core_type<tc>, window_params = [{transform_indices = @transform_0, window_bounds = array<i64: 16, 128>}, {pipeline_mode = #tpu.pipeline_mode<synchronous>, transform_indices = @transform_1, window_bounds = array<i64: 128, 128>}, {pipeline_mode = #tpu.pipeline_mode<synchronous>, transform_indices = @transform_2, window_bounds = array<i64: 1, 128>}, {pipeline_mode = #tpu.pipeline_mode<synchronous>, transform_indices = @transform_3, window_bounds = array<i64: 128, 128>}, {pipeline_mode = #tpu.pipeline_mode<synchronous>, transform_indices = @transform_4, window_bounds = array<i64: 1, 128>}, {transform_indices = @transform_5, window_bounds = array<i64: 16, 128>}]} {
    %c0 = arith.constant 0 : index
    %c0_0 = arith.constant 0 : index
    %0 = vector.load %arg1[%c0, %c0_0] : memref<16x128xf32, #tpu.memory_space<vmem>>, vector<16x128xf32>
    %c0_1 = arith.constant 0 : index
    %c0_2 = arith.constant 0 : index
    %1 = vector.load %arg2[%c0_1, %c0_2] : memref<128x128xf32, #tpu.memory_space<vmem>>, vector<128x128xf32>
    %cst = arith.constant dense<0.000000e+00> : vector<16x128xf32>
    %2 = tpu.matmul %0, %1, %cst {dimension_numbers = #tpu.dot_dimension_numbers<[1], [0], [0], [1], [0, 0, 1, 1], [], []>} : vector<16x128xf32>, vector<128x128xf32>, vector<16x128xf32> -> vector<16x128xf32>
    %c0_3 = arith.constant 0 : index
    %c0_4 = arith.constant 0 : index
    %3 = vector.load %arg3[%c0_3, %c0_4] : memref<1x128xf32, #tpu.memory_space<vmem>>, vector<1x128xf32>
    %4 = vector.broadcast %3 : vector<1x128xf32> to vector<16x128xf32>
    %5 = arith.addf %2, %4 : vector<16x128xf32>
    %cst_5 = arith.constant 5.000000e-01 : f32
    %6 = vector.broadcast %cst_5 : f32 to vector<16x128xf32>
    %7 = arith.mulf %6, %5 : vector<16x128xf32>
    %cst_6 = arith.constant 0.707106769 : f32
    %8 = vector.broadcast %cst_6 : f32 to vector<16x128xf32>
    %9 = arith.mulf %5, %8 : vector<16x128xf32>
    %10 = math.erf %9 : vector<16x128xf32>
    %cst_7 = arith.constant 1.000000e+00 : f32
    %11 = vector.broadcast %cst_7 : f32 to vector<16x128xf32>
    %12 = arith.addf %11, %10 : vector<16x128xf32>
    %13 = arith.mulf %7, %12 : vector<16x128xf32>
    %c0_8 = arith.constant 0 : index
    %c0_9 = arith.constant 0 : index
    %14 = vector.load %arg4[%c0_8, %c0_9] : memref<128x128xf32, #tpu.memory_space<vmem>>, vector<128x128xf32>
    %cst_10 = arith.constant dense<0.000000e+00> : vector<16x128xf32>
    %15 = tpu.matmul %13, %14, %cst_10 {dimension_numbers = #tpu.dot_dimension_numbers<[1], [0], [0], [1], [0, 0, 1, 1], [], []>} : vector<16x128xf32>, vector<128x128xf32>, vector<16x128xf32> -> vector<16x128xf32>
    %c0_11 = arith.constant 0 : index
    %c0_12 = arith.constant 0 : index
    %16 = vector.load %arg5[%c0_11, %c0_12] : memref<1x128xf32, #tpu.memory_space<vmem>>, vector<1x128xf32>
    %17 = vector.broadcast %16 : vector<1x128xf32> to vector<16x128xf32>
    %18 = arith.addf %15, %17 : vector<16x128xf32>
    %c0_13 = arith.constant 0 : index
    %c0_14 = arith.constant 0 : index
    %19 = vector.load %arg6[%c0_13, %c0_14] : memref<16x128xf32, #tpu.memory_space<vmem>>, vector<16x128xf32>
    tpu.vector_store %arg6[%c0_13, %c0_14], %18 {strides = array<i32>} : memref<16x128xf32, #tpu.memory_space<vmem>>, vector<16x128xf32>,
    return
  }
  func.func @transform_0(%arg0: i32) -> (i32, i32) {
    %c0_i32 = arith.constant 0 : i32
    %c0_i32_0 = arith.constant 0 : i32
    return %arg0, %c0_i32 : i32, i32
  }
  func.func @transform_1(%arg0: i32) -> (i32, i32) {
    %c0_i32 = arith.constant 0 : i32
    %c0_i32_0 = arith.constant 0 : i32
    %c0_i32_1 = arith.constant 0 : i32
    return %c0_i32, %c0_i32_0 : i32, i32
  }
  func.func @transform_2(%arg0: i32) -> (i32, i32) {
    %c0_i32 = arith.constant 0 : i32
    %c0_i32_0 = arith.constant 0 : i32
    %c0_i32_1 = arith.constant 0 : i32
    return %c0_i32, %c0_i32_0 : i32, i32
  }
  func.func @transform_3(%arg0: i32) -> (i32, i32) {
    %c0_i32 = arith.constant 0 : i32
    %c0_i32_0 = arith.constant 0 : i32
    %c0_i32_1 = arith.constant 0 : i32
    return %c0_i32, %c0_i32_0 : i32, i32
  }
  func.func @transform_4(%arg0: i32) -> (i32, i32) {
    %c0_i32 = arith.constant 0 : i32
    %c0_i32_0 = arith.constant 0 : i32
    %c0_i32_1 = arith.constant 0 : i32
    return %c0_i32, %c0_i32_0 : i32, i32
  }
  func.func @transform_5(%arg0: i32) -> (i32, i32) {
    %c0_i32 = arith.constant 0 : i32
    %c0_i32_0 = arith.constant 0 : i32
    return %arg0, %c0_i32 : i32, i32
  }
}

</mosaic_0001>

<bundles_post_ra>
// kernel: _gpt2_mlp_forward.1
= control target key start
LH: loop header
LB: loop body
LE: loop exit
PB: predicated region body
PF: predicated region fallthrough
CT: control target
= control target key end

     0   :  { %10 = vsyncpa [#allocation3], 0  ;;  %s568_s0 = inlined_call_operand.vmem [shape: f32[16,128], index: 0, kind: input, shape index: {}]   ;;  %s569_s1 = inlined_call_operand.hbm [shape: f32[128,128], index: 1, kind: input, shape index: {}]   ;;  %s570_s2 = inlined_call_operand.vmem [shape: f32[1,128], index: 2, kind: input, shape index: {}]   ;;  %s571_s3 = inlined_call_operand.hbm [shape: f32[128,128], index: 3, kind: input, shape index: {}]   ;;  %s572_s4 = inlined_call_operand.vmem [shape: f32[1,128], index: 4, kind: input, shape index: {}]   ;;  %s573_s5 = inlined_call_operand.vmem [shape: f32[16,128], index: 5, kind: output, shape index: {}]  }
   0x1   :  { %11 = vsyncpa [#allocation5], 0  ;;  %s492_s18 = smov [#allocation2]   ;;  %s444_s22 = scalar_lea.hbm %s569_s1, 2048 }
   0x2   :  { %s19_s19 = sshll.u32 %s492_s18, 4  ;;  %p445_p0 = scmp.ne.s32.totalorder %s569_s1, %s444_s22  ;;  %s20_s19 = int_to_ptr.vmem [resolvable:$true] %s19_s19 }
   0x3   :  { %p448_p1 = scmp.lt.u32.totalorder %s444_s22, %s569_s1 }
   0x5   :  { %p450_p2 = pnand %p448_p1, %p445_p0 }
   0x7   :  { %453 = shalt.err (!%p450_p2)
}
   0x8   :  { %s454_s27 = scalar_lea.vmem %s20_s19, 2048  ;;  %p459_p4 = scmp.lt.s32.totalorder %s20_s19, %s20_s19 }
   0x9   :  { %p455_p3 = scmp.ne.s32.totalorder %s20_s19, %s454_s27  ;;  %p460_p5 = scmp.lt.s32.totalorder %s454_s27, %s454_s27 }
   0xb   :  { %p461_p6 = por %p460_p5, %p459_p4 }
   0xd   :  { %p462_p7 = pnand %p461_p6, %p455_p3 }
   0xf   :  { %465 = shalt.err (!%p462_p7)
}
  0x10   :  { %s493_s28 = smov 128   ;;  %s494_s29 = smov 8  }
  0x11   :  { %25 = dma.hbm_to_vmem [thread:$0]  %s569_s1, 2048, %s20_s19, [#allocation3], %s493_s28, %s493_s28, %s494_s29  }
  0x12   :  { %s495_s7 = smov [#allocation4]   ;;  %s466_s11 = scalar_lea.hbm %s571_s3, 2048 }
  0x13   :  { %s33_s8 = sshll.u32 %s495_s7, 4  ;;  %p467_p8 = scmp.ne.s32.totalorder %s571_s3, %s466_s11  ;;  %s34_s8 = int_to_ptr.vmem [resolvable:$true] %s33_s8 }
  0x14   :  { %p470_p9 = scmp.lt.u32.totalorder %s466_s11, %s571_s3 }
  0x16   :  { %p472_p10 = pnand %p470_p9, %p467_p8 }
  0x18   :  { %475 = shalt.err (!%p472_p10)
}
  0x19   :  { %s476_s16 = scalar_lea.vmem %s34_s8, 2048  ;;  %p481_p12 = scmp.lt.s32.totalorder %s34_s8, %s34_s8 }
  0x1a   :  { %p477_p11 = scmp.ne.s32.totalorder %s34_s8, %s476_s16  ;;  %p482_p13 = scmp.lt.s32.totalorder %s476_s16, %s476_s16 }
  0x1c   :  { %p483_p0 = por %p482_p13, %p481_p12 }
  0x1e   :  { %p484_p1 = pnand %p483_p0, %p477_p11 }
  0x20   :  { %487 = shalt.err (!%p484_p1)
}
  0x21   :  { %39 = dma.hbm_to_vmem [thread:$0]  %s571_s3, 2048, %s34_s8, [#allocation5], %s493_s28, %s493_s28, %s494_s29  }
  0x22   :  { %488 = dma.done.wait [#allocation3], 2048  }
  0x23   :  { %489 = vsyncadd [#allocation3], 4294965248 }
  0x24   :  { %490 = dma.done.wait [#allocation5], 2048  }
  0x25   :  { %491 = vsyncadd [#allocation5], 4294965248  ;;  %v50_v0 = vld [vmem:[#allocation2] sm:$0xff]  ;;  %v51_v1 = vld [vmem:[#allocation2 + $0x8] sm:$0xff] }
  0x26   :  { %v52_v2 = vld [vmem:[#allocation2 + $0x10] sm:$0xff]  ;;  %v372_v3 = vpack.c.bf16 %v51_v1, %v50_v0  ;;  %v53_v4 = vld [vmem:[#allocation2 + $0x18] sm:$0xff]  ;;  %v54_v6 = vld [vmem:[#allocation2 + $0x20] sm:$0xff] }
  0x27   :  { %v376_v5 = vpack.c.bf16 %v53_v4, %v52_v2  ;;  %v55_v7 = vld [vmem:[#allocation2 + $0x28] sm:$0xff]  ;;  %v56_v9 = vld [vmem:[#allocation2 + $0x30] sm:$0xff]  ;;  %v57_v10 = vld [vmem:[#allocation2 + $0x38] sm:$0xff] }
  0x28   :  { %373 = vmatprep.subr.bf16.mxu0 %v372_v3  ;;  %v380_v8 = vpack.c.bf16 %v55_v7, %v54_v6  ;;  %v48_v11 = vld [vmem:[%s568_s0] sm:$0xff]  ;;  %v159_v13 = vld [vmem:[#allocation4 + $0x8] sm:$0xff]  ;;  %v160_v14 = vld [vmem:[#allocation4 + $0x10] sm:$0xff]  ;;  %v384_v20 = vpack.c.bf16 %v57_v10, %v56_v9 }
  0x29   :  { %375 = vmatpush3.bf16.msra.mxu0 %v372_v3  ;;  %334 = vmatprep.mubr.f32.mxu0 %v48_v11  ;;  %v158_v12 = vld [vmem:[#allocation4] sm:$0xff]  ;;  %v161_v16 = vld [vmem:[#allocation4 + $0x18] sm:$0xff]  ;;  %v163_v19 = vld [vmem:[#allocation4 + $0x28] sm:$0xff] }
  0x2a   :  { %377 = vmatprep.subr.bf16.mxu0 %v376_v5  ;;  %v404_v15 = vpack.c.bf16 %v159_v13, %v158_v12  ;;  %v408_v17 = vpack.c.bf16 %v161_v16, %v160_v14  ;;  %v162_v18 = vld [vmem:[#allocation4 + $0x20] sm:$0xff]  ;;  %v59_v22 = vld [vmem:[#allocation2 + $0x48] sm:$0xff]  ;;  %v60_v25 = vld [vmem:[#allocation2 + $0x50] sm:$0xff] }
  0x2b   :  { %v58_v21 = vld [vmem:[#allocation2 + $0x40] sm:$0xff]  ;;  %v412_v23 = vpack.c.bf16 %v163_v19, %v162_v18  ;;  %v61_v26 = vld [vmem:[#allocation2 + $0x58] sm:$0xff]  ;;  %v63_v29 = vld [vmem:[#allocation2 + $0x68] sm:$0xff] }
  0x2c   :  { %405 = vmatprep.subr.bf16.mxu1 %v404_v15  ;;  %v388_v24 = vpack.c.bf16 %v59_v22, %v58_v21  ;;  %v392_v27 = vpack.c.bf16 %v61_v26, %v60_v25  ;;  %v62_v28 = vld [vmem:[#allocation2 + $0x60] sm:$0xff]  ;;  %v64_v31 = vld [vmem:[#allocation2 + $0x70] sm:$0xff]  ;;  %v65_v32 = vld [vmem:[#allocation2 + $0x78] sm:$0xff] }
  0x2d   :  { %379 = vmatpush3.bf16.msra.mxu0 %v376_v5  ;;  %407 = vmatpush3.bf16.msra.mxu1 %v404_v15  ;;  %v396_v30 = vpack.c.bf16 %v63_v29, %v62_v28  ;;  %v400_v33 = vpack.c.bf16 %v65_v32, %v64_v31  ;;  %v49_v34 = vld [vmem:[%s568_s0 + $0x8] sm:$0xff]  ;;  %v164_v35 = vld [vmem:[#allocation4 + $0x30] sm:$0xff]  ;;  %v165_v36 = vld [vmem:[#allocation4 + $0x38] sm:$0xff] }
  0x2e   :  { %381 = vmatprep.subr.bf16.mxu0 %v380_v8  ;;  %409 = vmatprep.subr.bf16.mxu1 %v408_v17  ;;  %v416_v37 = vpack.c.bf16 %v165_v36, %v164_v35  ;;  %v166_v38 = vld [vmem:[#allocation4 + $0x40] sm:$0xff]  ;;  %v167_v39 = vld [vmem:[#allocation4 + $0x48] sm:$0xff]  ;;  %v168_v41 = vld [vmem:[#allocation4 + $0x50] sm:$0xff] }
  0x2f   :  { %v420_v40 = vpack.c.bf16 %v167_v39, %v166_v38  ;;  %v169_v42 = vld [vmem:[#allocation4 + $0x58] sm:$0xff]  ;;  %v170_v44 = vld [vmem:[#allocation4 + $0x60] sm:$0xff]  ;;  %v171_v45 = vld [vmem:[#allocation4 + $0x68] sm:$0xff] }
  0x30   :  { %v424_v43 = vpack.c.bf16 %v169_v42, %v168_v41  ;;  %v428_v46 = vpack.c.bf16 %v171_v45, %v170_v44  ;;  %v172_v47 = vld [vmem:[#allocation4 + $0x70] sm:$0xff]  ;;  %v173_v48 = vld [vmem:[#allocation4 + $0x78] sm:$0xff]  ;;  %v264_v50 = vld [vmem:[%s570_s2] ss:$0 sm:$0xff] }
  0x31   :  { %383 = vmatpush3.bf16.msra.mxu0 %v380_v8  ;;  %411 = vmatpush3.bf16.msra.mxu1 %v408_v17  ;;  %v432_v49 = vpack.c.bf16 %v173_v48, %v172_v47  ;;  %v265_v1 = vld [vmem:[%s572_s4] ss:$0 sm:$0xff] }
  0x32   :  { %385 = vmatprep.subr.bf16.mxu0 %v384_v20  ;;  %413 = vmatprep.subr.bf16.mxu1 %v412_v23 }
  0x35   :  { %387 = vmatpush3.bf16.msra.mxu0 %v384_v20  ;;  %415 = vmatpush3.bf16.msra.mxu1 %v412_v23 }
  0x36   :  { %389 = vmatprep.subr.bf16.mxu0 %v388_v24  ;;  %417 = vmatprep.subr.bf16.mxu1 %v416_v37 }
  0x39   :  { %391 = vmatpush3.bf16.msra.mxu0 %v388_v24  ;;  %419 = vmatpush3.bf16.msra.mxu1 %v416_v37 }
  0x3a   :  { %393 = vmatprep.subr.bf16.mxu0 %v392_v27  ;;  %421 = vmatprep.subr.bf16.mxu1 %v420_v40 }
  0x3d   :  { %395 = vmatpush3.bf16.msra.mxu0 %v392_v27  ;;  %423 = vmatpush3.bf16.msra.mxu1 %v420_v40 }
  0x3e   :  { %397 = vmatprep.subr.bf16.mxu0 %v396_v30  ;;  %425 = vmatprep.subr.bf16.mxu1 %v424_v43 }
  0x41   :  { %399 = vmatpush3.bf16.msra.mxu0 %v396_v30  ;;  %427 = vmatpush3.bf16.msra.mxu1 %v424_v43 }
  0x42   :  { %401 = vmatprep.subr.bf16.mxu0 %v400_v33  ;;  %429 = vmatprep.subr.bf16.mxu1 %v428_v46 }
  0x45   :  { %403 = vmatpush3.bf16.msra.mxu0 %v400_v33  ;;  %431 = vmatpush3.bf16.msra.mxu1 %v428_v46 }
  0x46   :  { %433 = vmatprep.subr.bf16.mxu1 %v432_v49 }
  0x48   :  { %335 = vmatmul.mubr.f32.vlgmr.msra.gmra.mrb[0].mxu0 %v49_v34 }
  0x49   :  { %435 = vmatpush3.bf16.msra.mxu1 %v432_v49 }
 0x11b   :  { %v336_v51 = vpop.f32.mrb[0].mxu0 }
 0x11c   :  { %v145_v52 = vadd.f32 %v336_v51, %v264_v50  ;;  %v139_v53 = vpop.f32.mrb[1].mxu0 }
 0x11d   :  { %v140_v54 = vadd.f32 %v264_v50, %v139_v53 }
 0x11e   :  { %v151_v55 = vmul.f32 0.70710677, %v145_v52  ;;  %v149_v62 = vmul.f32 0.5, %v145_v52 }
 0x11f   :  { %v150_v56 = vmul.f32 0.70710677, %v140_v54  ;;  %v148_v60 = vmul.f32 0.5, %v140_v54 }
 0x120   :  { %440 = verf.f32 %v151_v55 }
 0x121   :  { %442 = verf.f32 %v150_v56 }
 0x12a   :  { %v441_v57 = vpop.eup %440 }
 0x12b   :  { %v443_v58 = vpop.eup %442  ;;  %v155_v59 = vadd.f32 1.0, %v441_v57 }
 0x12c   :  { %v154_v61 = vadd.f32 1.0, %v443_v58 }
 0x12d   :  { %v157_v0 = vmul.f32 %v155_v59, %v149_v62 }
 0x12e   :  { %v156_v63 = vmul.f32 %v154_v61, %v148_v60 }
 0x130   :  { %369 = vmatprep.mubr.f32.mxu1 %v156_v63 }
 0x131   :  { %370 = vmatmul.mubr.f32.vlgmr.msra.gmra.mrb[0].mxu1 %v157_v0 }
 0x204   :  { %v371_v2 = vpop.f32.mrb[0].mxu1 }
 0x205   :  { %v253_v3 = vadd.f32 %v371_v2, %v265_v1  ;;  %v247_v4 = vpop.f32.mrb[1].mxu1 }
 0x206   :  { %v248_v5 = vadd.f32 %v265_v1, %v247_v4 }
 0x207   :  { %257 = vst [vmem:[%s573_s5 + $0x8] sm:$0xff] %v253_v3 }
 0x208   :  { %256 = vst [vmem:[%s573_s5] sm:$0xff] %v248_v5 }
 0x209   :  { %262 = vsyncpa [#allocation3], 1 }
 0x20a   :  { %263 = vsyncpa [#allocation5], 1 }

</bundles_post_ra>
